<compile_context>
chip_gen: v7x
topology: tpu7x:2x2x1
jax: 0.10.0
libtpu: 0.0.40
codegen_flags: <defaults>
</compile_context>

<pallas_src>
import functools

import jax
import jax.numpy as jnp
from jax.experimental import pallas as pl
from jax.experimental.pallas import tpu as pltpu

_NEG_LARGE = -1e30  # finite "-inf": avoids inf - inf = NaN in the online update


def _write_per_row(per_row_ref, per_sample, labels, i, tb, batch, ragged_b):
    """Write masked per-row NLL: 0 for label == -1 and for padded rows."""
    valid = labels != -1
    if ragged_b:
        row = i * tb + jax.lax.broadcasted_iota(jnp.int32, (tb, 1), 0)
        valid = valid & (row < batch)
    per_row_ref[...] = jnp.where(valid, per_sample, 0.0).astype(jnp.float32)


def _ce_mask_kernel(logits_ref, label_ref, per_row_ref, *scratch,
                    batch, classes, block_b, block_c, nc):
    """Streaming masked cross-entropy over class tiles.

    Grid = (batch_tiles, class_tiles); class axis (program_id(1)) is the
    reduction axis.
      logits_ref : (TB, TC) logits tile (f32 or bf16), upcast to f32 here
      label_ref  : (TB, 1)  int32 class index per row, -1 = masked out
      per_row_ref: (TB, 1)  f32: -log_softmax(row)[label] if valid else 0
      scratch    : () if nc == 1 else (m, s, p) (TB,1) f32 running
                   max / sum(exp) / picked logit
    """
    i = pl.program_id(0)

    labels = label_ref[...]                               # (TB, 1) int32
    logits = logits_ref[...].astype(jnp.float32)          # (TB, TC) f32
    tb, tc = logits.shape

    ragged_c = (classes % block_c) != 0
    ragged_b = (batch % block_b) != 0

    # Global column index of each lane in this tile.
    col = jax.lax.broadcasted_iota(jnp.int32, (tb, tc), 1)
    if nc > 1:
        k = pl.program_id(1)
        col = col + k * block_c

    if ragged_c:
        # Mask the ragged C tail so out-of-bounds garbage never reaches
        # max / exp for valid rows.
        in_range = col < classes
        masked_logits = jnp.where(in_range, logits, _NEG_LARGE)
        onehot = (col == labels) & in_range
    else:
        masked_logits = logits
        onehot = col == labels

    tile_max = jnp.max(masked_logits, axis=-1, keepdims=True)        # (TB, 1)
    tile_picked = jnp.sum(jnp.where(onehot, logits, 0.0),
                          axis=-1, keepdims=True)                    # (TB, 1)

    if nc == 1:
        # Single class tile: direct logsumexp, no scratch / rescale traffic.
        lse = tile_max + jnp.log(
            jnp.sum(jnp.exp(masked_logits - tile_max), axis=-1, keepdims=True))
        _write_per_row(per_row_ref, lse - tile_picked, labels,
                       i, tb, batch, ragged_b)
        return

    m_scr, s_scr, p_scr = scratch

    @pl.when(k == 0)
    def _init():
        m_scr[...] = jnp.full_like(m_scr, _NEG_LARGE)
        s_scr[...] = jnp.zeros_like(s_scr)
        p_scr[...] = jnp.zeros_like(p_scr)

    # ---- online logsumexp update -------------------------------------------
    m_new = jnp.maximum(m_scr[...], tile_max)
    scale = jnp.exp(m_scr[...] - m_new)
    tile_sum = jnp.sum(jnp.exp(masked_logits - m_new), axis=-1, keepdims=True)
    s_scr[...] = s_scr[...] * scale + tile_sum
    m_scr[...] = m_new

    # ---- gather the labelled logit (only the tile containing it adds) -------
    p_scr[...] = p_scr[...] + tile_picked

    # ---- epilogue: per-row masked NLL, written once per batch tile ----------
    @pl.when(k == nc - 1)
    def _finalize():
        lse = m_scr[...] + jnp.log(s_scr[...])
        _write_per_row(per_row_ref, lse - p_scr[...], labels,
                       i, tb, batch, ragged_b)


def cross_entropy_loss_with_mask(output, label, *, block_b=None, block_c=None):
    """output: (B, C) f32/bf16 logits; label: (B,) int, -1 = masked out."""
    B, C = output.shape
    label = jnp.asarray(label).reshape(B).astype(jnp.int32)

    # ---- tile selection ------------------------------------------------------
    # Defaults sized so double-buffered f32 logits tiles stay a few MiB, well
    # inside the scoped-VMEM defaults of v5e/v6e/v7x, while large enough to
    # amortize the ~0.35 us per-grid-step overhead.
    if block_b is None:
        block_b = B if B <= 256 else 256          # == B, or a multiple of 8
    if block_c is None:
        block_c = C if C <= 2048 else 2048        # == C, or a multiple of 128

    nb = pl.cdiv(B, block_b)
    nc = pl.cdiv(C, block_c)
    label2d = label.reshape(B, 1)

    elt = jnp.dtype(output.dtype).itemsize
    # Double-buffered logits stream plus small scratch/labels/output; cap below
    # v7x's 64 MiB physical VMEM.
    vmem_limit = int(min(64 * 1024 * 1024,
                         max(32 * 1024 * 1024, 3 * 2 * block_b * block_c * elt)))

    kernel = functools.partial(_ce_mask_kernel, batch=B, classes=C,
                               block_b=block_b, block_c=block_c, nc=nc)

    scratch_shapes = (
        [pltpu.VMEM((block_b, 1), jnp.float32)] * 3 if nc > 1 else [])

    per_row = pl.pallas_call(
        kernel,
        out_shape=jax.ShapeDtypeStruct((B, 1), jnp.float32),
        grid_spec=pltpu.PrefetchScalarGridSpec(
            num_scalar_prefetch=0,
            grid=(nb, nc),                                 # reduction axis last
            in_specs=[
                pl.BlockSpec((block_b, block_c), lambda i, k: (i, k)),
                # labels: depends only on the batch index -> DMA'd once per
                # batch tile, not re-copied for every class tile.
                pl.BlockSpec((block_b, 1), lambda i, k: (i, 0)),
            ],
            out_specs=pl.BlockSpec((block_b, 1), lambda i, k: (i, 0)),
            scratch_shapes=scratch_shapes,
        ),
        compiler_params=pltpu.CompilerParams(
            dimension_semantics=("parallel", "arbitrary"),
            vmem_limit_bytes=vmem_limit,
        ),
    )(output, label2d)

    # Final tiny reduction in plain JAX (safe under core-parallel batch tiles).
    valid = label != -1
    count = jnp.sum(valid.astype(jnp.float32))
    total = jnp.sum(per_row)
    safe_count = jnp.maximum(count, 1.0)          # avoid NaN in dead branch
    return jnp.where(count > 0.0, total / safe_count, 0.0)


def _reference(output, label):
    # Pure-JAX reference (same math as the PyTorch module).
    logits = output.astype(jnp.float32)
    label = jnp.asarray(label).reshape(-1).astype(jnp.int32)
    lse = jax.scipy.special.logsumexp(logits, axis=-1)
    picked = jnp.take_along_axis(
        logits, jnp.clip(label, 0, None).reshape(-1, 1), axis=-1).reshape(-1)
    per = lse - picked
    valid = label != -1
    cnt = jnp.sum(valid)
    return jnp.where(cnt > 0,
                     jnp.sum(jnp.where(valid, per, 0.0)) / jnp.maximum(cnt, 1),
                     0.0)


if __name__ == "__main__":
    key = jax.random.PRNGKey(0)

    # Case 1: toy shape from the original module (single tile on both axes).
    k1, k2 = jax.random.split(key)
    B, C = 8, 32
    out1 = jax.random.normal(k1, (B, C), dtype=jnp.float32)
    lab1 = jax.random.randint(k2, (B,), 0, C, dtype=jnp.int32)
    lab1 = lab1.at[1].set(-1).at[5].set(-1)
    loss1 = cross_entropy_loss_with_mask(out1, lab1)
    jax.block_until_ready(loss1)
    assert jnp.allclose(loss1, _reference(out1, lab1), atol=1e-5, rtol=1e-5), (
        loss1, _reference(out1, lab1))

    # Case 2: bf16 logits, multi-tile grid over both batch and class axes.
    k3, k4 = jax.random.split(k1)
    B2, C2 = 16, 512
    out2 = jax.random.normal(k3, (B2, C2), dtype=jnp.float32).astype(jnp.bfloat16)
    lab2 = jax.random.randint(k4, (B2,), 0, C2, dtype=jnp.int32)
    lab2 = lab2.at[0].set(-1).at[7].set(-1)
    loss2 = cross_entropy_loss_with_mask(out2, lab2, block_b=8, block_c=128)
    jax.block_until_ready(loss2)
    ref2 = _reference(out2.astype(jnp.float32), lab2)
    assert jnp.allclose(loss2, ref2, atol=1e-4, rtol=1e-4), (loss2, ref2)

    # Case 3: ragged B and C (exercise in-kernel edge masking, online lse).
    k5, k6 = jax.random.split(k3)
    B3, C3 = 10, 200
    out3 = jax.random.normal(k5, (B3, C3), dtype=jnp.float32)
    lab3 = jax.random.randint(k6, (B3,), 0, C3, dtype=jnp.int32)
    lab3 = lab3.at[3].set(-1)
    loss3 = cross_entropy_loss_with_mask(out3, lab3, block_b=8, block_c=128)
    jax.block_until_ready(loss3)
    assert jnp.allclose(loss3, _reference(out3, lab3), atol=1e-5, rtol=1e-5), (
        loss3, _reference(out3, lab3))

    # Case 4: all labels masked -> loss must be exactly 0.0.
    lab4 = jnp.full((B3,), -1, dtype=jnp.int32)
    loss4 = cross_entropy_loss_with_mask(out3, lab4)
    jax.block_until_ready(loss4)
    assert jnp.allclose(loss4, 0.0), loss4

    print("KERNEL_OK")
</pallas_src>

<mosaic_0001>
module attributes {stable_mosaic.version = 11 : i64} {
  func.func @_ce_mask_kernel(%arg0: i32, %arg1: i32, %arg2: memref<8x32xf32, #tpu.memory_space<vmem>>, %arg3: memref<8x1xi32, #tpu.memory_space<vmem>>, %arg4: memref<8x1xf32, #tpu.memory_space<vmem>>) attributes {dimension_semantics = [#tpu.dimension_semantics<parallel>, #tpu.dimension_semantics<arbitrary>], iteration_bounds = array<i64: 1, 1>, scalar_prefetch = 0 : i64, scratch_operands = 0 : i64, tpu.core_type = #tpu.core_type<tc>, window_params = [{transform_indices = @transform_0, window_bounds = array<i64: 8, 32>}, {transform_indices = @transform_1, window_bounds = array<i64: 8, 1>}, {transform_indices = @transform_2, window_bounds = array<i64: 8, 1>}]} {
    %c0 = arith.constant 0 : index
    %c0_0 = arith.constant 0 : index
    %0 = vector.load %arg3[%c0, %c0_0] : memref<8x1xi32, #tpu.memory_space<vmem>>, vector<8x1xi32>
    %c0_1 = arith.constant 0 : index
    %c0_2 = arith.constant 0 : index
    %1 = vector.load %arg2[%c0_1, %c0_2] : memref<8x32xf32, #tpu.memory_space<vmem>>, vector<8x32xf32>
    %2 = tpu.iota {dimensions = array<i32: 1>} : vector<8x32xi32>
    %3 = vector.broadcast %0 : vector<8x1xi32> to vector<8x32xi32>
    %4 = arith.cmpi eq, %2, %3 : vector<8x32xi32>
    %cst = arith.constant dense<0xFF800000> : vector<8xf32>
    %5 = vector.multi_reduction <maximumf>, %1, %cst [1] : vector<8x32xf32> to vector<8xf32>
    %6 = vector.shape_cast %5 : vector<8xf32> to vector<8x1xf32>
    %cst_3 = arith.constant 0.000000e+00 : f32
    %7 = vector.broadcast %cst_3 : f32 to vector<8x32xf32>
    %8 = arith.select %4, %1, %7 : vector<8x32xi1>, vector<8x32xf32>
    %cst_4 = arith.constant dense<0.000000e+00> : vector<8xf32>
    %9 = vector.multi_reduction <add>, %8, %cst_4 [1] : vector<8x32xf32> to vector<8xf32>
    %10 = vector.shape_cast %9 : vector<8xf32> to vector<8x1xf32>
    %11 = vector.broadcast %6 : vector<8x1xf32> to vector<8x32xf32>
    %12 = arith.subf %1, %11 : vector<8x32xf32>
    %13 = math.exp %12 : vector<8x32xf32>
    %cst_5 = arith.constant dense<0.000000e+00> : vector<8xf32>
    %14 = vector.multi_reduction <add>, %13, %cst_5 [1] : vector<8x32xf32> to vector<8xf32>
    %15 = vector.shape_cast %14 : vector<8xf32> to vector<8x1xf32>
    %16 = math.log %15 : vector<8x1xf32>
    %17 = arith.addf %6, %16 : vector<8x1xf32>
    %18 = arith.subf %17, %10 : vector<8x1xf32>
    %c-1_i32 = arith.constant -1 : i32
    %19 = vector.broadcast %c-1_i32 : i32 to vector<8x1xi32>
    %20 = arith.cmpi ne, %0, %19 : vector<8x1xi32>
    %cst_6 = arith.constant 0.000000e+00 : f32
    %21 = vector.broadcast %cst_6 : f32 to vector<8x1xf32>
    %22 = arith.select %20, %18, %21 : vector<8x1xi1>, vector<8x1xf32>
    %c0_7 = arith.constant 0 : index
    %c0_8 = arith.constant 0 : index
    %23 = vector.load %arg4[%c0_7, %c0_8] : memref<8x1xf32, #tpu.memory_space<vmem>>, vector<8x1xf32>
    tpu.vector_store %arg4[%c0_7, %c0_8], %22 {strides = array<i32>} : memref<8x1xf32, #tpu.memory_space<vmem>>, vector<8x1xf32>,
    return
  }
  func.func @transform_0(%arg0: i32, %arg1: i32) -> (i32, i32) {
    %c0_i32 = arith.constant 0 : i32
    return %arg0, %arg1 : i32, i32
  }
  func.func @transform_1(%arg0: i32, %arg1: i32) -> (i32, i32) {
    %c0_i32 = arith.constant 0 : i32
    %c0_i32_0 = arith.constant 0 : i32
    return %arg0, %c0_i32 : i32, i32
  }
  func.func @transform_2(%arg0: i32, %arg1: i32) -> (i32, i32) {
    %c0_i32 = arith.constant 0 : i32
    %c0_i32_0 = arith.constant 0 : i32
    return %arg0, %c0_i32 : i32, i32
  }
}

</mosaic_0001>

<bundles_post_ra>
// kernel: tpu_custom_call.1
= control target key start
LH: loop header
LB: loop body
LE: loop exit
PB: predicated region body
PF: predicated region fallthrough
CT: control target
= control target key end

     0   :  { %vm19_vm0 = vcmask 261120   ;;  %v51_v1 = vmov 0   ;;  %v13_v7 = vlaneseq  ;;  %vm39_vm3 = vcmask 7168   ;;  %s79_s0 = inlined_call_operand.vmem [shape: f32[8,32], index: 0, kind: input, shape index: {}]   ;;  %s80_s1 = inlined_call_operand.vmem [shape: s32[8,1], index: 1, kind: input, shape index: {}]   ;;  %s81_s2 = inlined_call_operand.vmem [shape: f32[8,1], index: 2, kind: output, shape index: {}]  }
   0x1   :  { %v12_v0 = vld [vmem:[%s79_s0] sm:$0xff]  ;;  %46 = vset.pattern.permute.xlu0 %v51_v1 }
   0x2   :  { %v20_v2 = vsel %vm19_vm0, %v12_v0, -inf  ;;  %v11_v3 = vld [vmem:[%s80_s1] sm:$0xff]  ;;  %v14_v8 = vand.u32 127, %v13_v7 }
   0x3   :  { %21 = vmax.xlane.f32.xlu0 %v20_v2  ;;  %vm37_vm2 = vcmp.ne.s32.totalorder %v11_v3, 4294967295 }
  0x19   :  { %16 = vperm.xlu0 %46, %v11_v3  }
  0x90   :  { %v22_v4 = vpop.xlane.xlu0 %21 }
  0x91   :  { %v27_v5 = vsub.f32 %v12_v0, %v22_v4 }
  0x93   :  { %v28_v6 = vmul.f32 1.442695, %v27_v5 }
  0x95   :  { %47 = vpow2.f32 %v28_v6 }
  0x98   :  { %v17_v9 = vpop.permute.xlu0 %16 }
  0x99   :  { %vm18_vm1 = vcmp.eq.s32.totalorder %v14_v8, %v17_v9 }
  0x9a   :  { %v23_v11 = vsel %vm18_vm1, %v12_v0, 0.0 }
  0x9b   :  { %v24_v13 = vsel %vm19_vm0, %v23_v11, 0.0 }
  0x9f   :  { %v48_v10 = vpop.eup %47 }
  0xa0   :  { %v30_v12 = vsel %vm19_vm0, %v48_v10, 0.0 }
  0xa1   :  { %31 = vadd.xlane.f32.xlu1 %v30_v12 }
  0xa5   :  { %25 = vadd.xlane.f32.xlu1 %v24_v13 }
 0x12e   :  { %v32_v14 = vpop.xlane.xlu1 %31 }
 0x12f   :  { %49 = vlog2.f32 %v32_v14 }
 0x132   :  { %v26_v17 = vpop.xlane.xlu1 %25 }
 0x139   :  { %v50_v15 = vpop.eup %49 }
 0x13a   :  { %v34_v16 = vmul.f32 0.6931472, %v50_v15 }
 0x13c   :  { %v35_v18 = vadd.f32 %v34_v16, %v22_v4 }
 0x13e   :  { %v36_v19 = vsub.f32 %v35_v18, %v26_v17 }
 0x140   :  { %v38_v20 = vsel %vm37_vm2, %v36_v19, 0.0 }
 0x141   :  { %40 = vst.msk [vmem:[%s81_s2] sm:$0xff] %vm39_vm3, %v38_v20 }

</bundles_post_ra>
